<compile_context>
chip_gen: v6e
topology: v6e:2x2x1
jax: 0.10.0
libtpu: 0.0.40
codegen_flags: <defaults>
</compile_context>

<pallas_src>
import jax
import jax.numpy as jnp
from jax.experimental import pallas as pl
from jax.experimental.pallas import tpu as pltpu

IN_DIM = 28 * 28      # 784
HID = 128
OUT = 10
OUT_PAD = 128         # lane-dense output width (multiple of 128)


def _round_up(x, m):
    return ((x + m - 1) // m) * m


def mlp_kernel(x_ref, w1_ref, b1_ref, w2_ref, o_ref):
    # x_ref:  (TILE_B, 784) bf16     w1_ref: (784, 128) bf16
    # b1_ref: (1, 128)      f32      w2_ref: (128, 128) bf16 (cols >= 10 zero)
    # o_ref:  (TILE_B, 128) f32      (softmax probs; cols >= 10 are 0)
    # fc1 + bias + ReLU -- MXU matmul with f32 accumulation.
    h = jnp.dot(x_ref[...], w1_ref[...], preferred_element_type=jnp.float32)
    h = jnp.maximum(h + b1_ref[...], 0.0)
    # fc2 (no bias), lane-dense N = 128.
    logits = jnp.dot(h.astype(jnp.bfloat16), w2_ref[...],
                     preferred_element_type=jnp.float32)
    # Mask the padded columns so they contribute exp(.) = 0 to the softmax.
    col = jax.lax.broadcasted_iota(jnp.int32, logits.shape, 1)
    logits = jnp.where(col < OUT, logits, -jnp.inf)
    # Numerically stable softmax over the last axis.
    m = jnp.max(logits, axis=-1, keepdims=True)
    e = jnp.exp(logits - m)
    denom = jnp.sum(e, axis=-1, keepdims=True)
    # EUP approximate reciprocal instead of a VPU divide.
    o_ref[...] = (e * pl.reciprocal(denom, approx=True)).astype(o_ref.dtype)


def net_forward(x_nchw, w1, b1, w2, *, tile_b=512):
    """Equivalent of Net.forward: softmax(relu(x @ W1 + b1) @ W2, dim=1)."""
    B = x_nchw.shape[0]

    # Flatten and cast activations to bf16 (halves x DMA bytes).
    x = x_nchw.reshape(B, -1).astype(jnp.bfloat16)

    # Batch tile: multiple of 16 (bf16 sublane packing); 512 rows keeps the
    # double-buffered x tiles far inside v7x's 64 MiB VMEM on every generation.
    TILE_B = min(tile_b, _round_up(B, 16))
    B_pad = _round_up(B, TILE_B)
    if B_pad != B:
        x = jnp.pad(x, ((0, B_pad - B), (0, 0)))

    w1_bf = w1.astype(jnp.bfloat16)                     # (784, 128)
    b1_2d = b1.reshape(1, HID).astype(jnp.float32)      # (1, 128)
    w2_p = jnp.pad(w2.astype(jnp.bfloat16),             # (128, 128), zero cols
                   ((0, 0), (0, OUT_PAD - OUT)))

    n_tiles = B_pad // TILE_B

    cost = pl.CostEstimate(
        flops=2 * B_pad * IN_DIM * HID + 2 * B_pad * HID * OUT_PAD,
        transcendentals=B_pad * (OUT_PAD + 1),
        bytes_accessed=(x.size * 2 + w1_bf.size * 2 + b1_2d.size * 4
                        + w2_p.size * 2 + B_pad * OUT_PAD * 4),
    )

    out_padded = pl.pallas_call(
        mlp_kernel,
        out_shape=jax.ShapeDtypeStruct((B_pad, OUT_PAD), jnp.float32),
        grid_spec=pl.GridSpec(
            grid=(n_tiles,),
            in_specs=[
                pl.BlockSpec((TILE_B, IN_DIM), lambda i: (i, 0)),   # x tile
                pl.BlockSpec((IN_DIM, HID), lambda i: (0, 0)),      # W1 resident
                pl.BlockSpec((1, HID), lambda i: (0, 0)),           # b1 resident
                pl.BlockSpec((HID, OUT_PAD), lambda i: (0, 0)),     # W2 resident
            ],
            out_specs=pl.BlockSpec((TILE_B, OUT_PAD), lambda i: (i, 0)),
        ),
        compiler_params=pltpu.CompilerParams(
            dimension_semantics=("parallel",),          # megacore on v7x
            vmem_limit_bytes=32 * 1024 * 1024,
        ),
        cost_estimate=cost,
    )(x, w1_bf, b1_2d, w2_p)

    # Drop batch padding and lane padding -> (B, 10).
    return out_padded[:B, :OUT]


def init_params(key):
    # Deterministic synthetic init (PyTorch-style uniform +-1/sqrt(fan_in)).
    k1, k2, k3 = jax.random.split(key, 3)
    bound1 = 1.0 / jnp.sqrt(IN_DIM)
    bound2 = 1.0 / jnp.sqrt(HID)
    w1 = jax.random.uniform(k1, (IN_DIM, HID), jnp.float32, -bound1, bound1)
    b1 = jax.random.uniform(k2, (HID,), jnp.float32, -bound1, bound1)
    w2 = jax.random.uniform(k3, (HID, OUT), jnp.float32, -bound2, bound2)
    return w1, b1, w2


def _reference(x_nchw, w1, b1, w2):
    # Pure-JAX reference with the same bf16 matmul inputs / f32 accumulation.
    x = x_nchw.reshape(x_nchw.shape[0], -1).astype(jnp.bfloat16)
    h = jnp.dot(x, w1.astype(jnp.bfloat16), preferred_element_type=jnp.float32)
    h = jnp.maximum(h + b1[None, :], 0.0)
    logits = jnp.dot(h.astype(jnp.bfloat16), w2.astype(jnp.bfloat16),
                     preferred_element_type=jnp.float32)
    return jax.nn.softmax(logits, axis=1)


if __name__ == "__main__":
    key = jax.random.PRNGKey(0)
    kx, kp = jax.random.split(key)
    B = 8
    x = jax.random.normal(kx, (B, 1, 28, 28), jnp.float32)   # NCHW MNIST-like
    w1, b1, w2 = init_params(kp)

    out = net_forward(x, w1, b1, w2)
    out = jax.block_until_ready(out)

    assert out.shape == (B, OUT)
    # softmax rows sum to 1 (small slack for the approx reciprocal).
    row_sums = jnp.sum(out, axis=1)
    assert bool(jnp.all(jnp.abs(row_sums - 1.0) < 1e-2))
    # match a pure-JAX reference of the same math
    ref = _reference(x, w1, b1, w2)
    assert bool(jnp.max(jnp.abs(out - ref)) < 2e-2)

    print("KERNEL_OK")
</pallas_src>

<mosaic_0001>
module attributes {stable_mosaic.version = 11 : i64} {
  func.func @mlp_kernel(%arg0: i32, %arg1: memref<16x784xbf16, #tpu.memory_space<vmem>>, %arg2: memref<784x128xbf16, #tpu.memory_space<vmem>>, %arg3: memref<1x128xf32, #tpu.memory_space<vmem>>, %arg4: memref<128x128xbf16, #tpu.memory_space<vmem>>, %arg5: memref<16x128xf32, #tpu.memory_space<vmem>>) attributes {dimension_semantics = [#tpu.dimension_semantics<parallel>], iteration_bounds = array<i64: 1>, scalar_prefetch = 0 : i64, scratch_operands = 0 : i64, tpu.core_type = #tpu.core_type<tc>, window_params = [{transform_indices = @transform_0, window_bounds = array<i64: 16, 784>}, {pipeline_mode = #tpu.pipeline_mode<synchronous>, transform_indices = @transform_1, window_bounds = array<i64: 784, 128>}, {pipeline_mode = #tpu.pipeline_mode<synchronous>, transform_indices = @transform_2, window_bounds = array<i64: 1, 128>}, {pipeline_mode = #tpu.pipeline_mode<synchronous>, transform_indices = @transform_3, window_bounds = array<i64: 128, 128>}, {transform_indices = @transform_4, window_bounds = array<i64: 16, 128>}]} {
    %c0 = arith.constant 0 : index
    %c0_0 = arith.constant 0 : index
    %0 = vector.load %arg1[%c0, %c0_0] : memref<16x784xbf16, #tpu.memory_space<vmem>>, vector<16x784xbf16>
    %c0_1 = arith.constant 0 : index
    %c0_2 = arith.constant 0 : index
    %1 = vector.load %arg2[%c0_1, %c0_2] : memref<784x128xbf16, #tpu.memory_space<vmem>>, vector<784x128xbf16>
    %cst = arith.constant dense<0.000000e+00> : vector<16x128xf32>
    %2 = tpu.matmul %0, %1, %cst {dimension_numbers = #tpu.dot_dimension_numbers<[1], [0], [0], [1], [0, 0, 1, 1], [], []>} : vector<16x784xbf16>, vector<784x128xbf16>, vector<16x128xf32> -> vector<16x128xf32>
    %c0_3 = arith.constant 0 : index
    %c0_4 = arith.constant 0 : index
    %3 = vector.load %arg3[%c0_3, %c0_4] : memref<1x128xf32, #tpu.memory_space<vmem>>, vector<1x128xf32>
    %4 = vector.broadcast %3 : vector<1x128xf32> to vector<16x128xf32>
    %5 = arith.addf %2, %4 : vector<16x128xf32>
    %cst_5 = arith.constant 0.000000e+00 : f32
    %6 = vector.broadcast %cst_5 : f32 to vector<16x128xf32>
    %7 = arith.maximumf %5, %6 : vector<16x128xf32>
    %8 = arith.truncf %7 : vector<16x128xf32> to vector<16x128xbf16>
    %c0_6 = arith.constant 0 : index
    %c0_7 = arith.constant 0 : index
    %9 = vector.load %arg4[%c0_6, %c0_7] : memref<128x128xbf16, #tpu.memory_space<vmem>>, vector<128x128xbf16>
    %cst_8 = arith.constant dense<0.000000e+00> : vector<16x128xf32>
    %10 = tpu.matmul %8, %9, %cst_8 {dimension_numbers = #tpu.dot_dimension_numbers<[1], [0], [0], [1], [0, 0, 1, 1], [], []>} : vector<16x128xbf16>, vector<128x128xbf16>, vector<16x128xf32> -> vector<16x128xf32>
    %11 = tpu.iota {dimensions = array<i32: 1>} : vector<16x128xi32>
    %c10_i32 = arith.constant 10 : i32
    %12 = vector.broadcast %c10_i32 : i32 to vector<16x128xi32>
    %13 = arith.cmpi slt, %11, %12 : vector<16x128xi32>
    %cst_9 = arith.constant 0xFF800000 : f32
    %14 = vector.broadcast %cst_9 : f32 to vector<16x128xf32>
    %15 = arith.select %13, %10, %14 : vector<16x128xi1>, vector<16x128xf32>
    %cst_10 = arith.constant dense<0xFF800000> : vector<16xf32>
    %16 = vector.multi_reduction <maximumf>, %15, %cst_10 [1] : vector<16x128xf32> to vector<16xf32>
    %17 = vector.shape_cast %16 : vector<16xf32> to vector<16x1xf32>
    %18 = vector.broadcast %17 : vector<16x1xf32> to vector<16x128xf32>
    %19 = arith.subf %15, %18 : vector<16x128xf32>
    %20 = math.exp %19 : vector<16x128xf32>
    %cst_11 = arith.constant dense<0.000000e+00> : vector<16xf32>
    %21 = vector.multi_reduction <add>, %20, %cst_11 [1] : vector<16x128xf32> to vector<16xf32>
    %22 = vector.shape_cast %21 : vector<16xf32> to vector<16x1xf32>
    %23 = tpu.reciprocal %22 {approx = true} : vector<16x1xf32> -> vector<16x1xf32>
    %24 = vector.broadcast %23 : vector<16x1xf32> to vector<16x128xf32>
    %25 = arith.mulf %20, %24 : vector<16x128xf32>
    %c0_12 = arith.constant 0 : index
    %c0_13 = arith.constant 0 : index
    %26 = vector.load %arg5[%c0_12, %c0_13] : memref<16x128xf32, #tpu.memory_space<vmem>>, vector<16x128xf32>
    tpu.vector_store %arg5[%c0_12, %c0_13], %25 {strides = array<i32>} : memref<16x128xf32, #tpu.memory_space<vmem>>, vector<16x128xf32>,
    return
  }
  func.func @transform_0(%arg0: i32) -> (i32, i32) {
    %c0_i32 = arith.constant 0 : i32
    %c0_i32_0 = arith.constant 0 : i32
    return %arg0, %c0_i32 : i32, i32
  }
  func.func @transform_1(%arg0: i32) -> (i32, i32) {
    %c0_i32 = arith.constant 0 : i32
    %c0_i32_0 = arith.constant 0 : i32
    %c0_i32_1 = arith.constant 0 : i32
    return %c0_i32, %c0_i32_0 : i32, i32
  }
  func.func @transform_2(%arg0: i32) -> (i32, i32) {
    %c0_i32 = arith.constant 0 : i32
    %c0_i32_0 = arith.constant 0 : i32
    %c0_i32_1 = arith.constant 0 : i32
    return %c0_i32, %c0_i32_0 : i32, i32
  }
  func.func @transform_3(%arg0: i32) -> (i32, i32) {
    %c0_i32 = arith.constant 0 : i32
    %c0_i32_0 = arith.constant 0 : i32
    %c0_i32_1 = arith.constant 0 : i32
    return %c0_i32, %c0_i32_0 : i32, i32
  }
  func.func @transform_4(%arg0: i32) -> (i32, i32) {
    %c0_i32 = arith.constant 0 : i32
    %c0_i32_0 = arith.constant 0 : i32
    return %arg0, %c0_i32 : i32, i32
  }
}

</mosaic_0001>

<bundles_post_ra>
// kernel: tpu_custom_call.1
= control target key start
LH: loop header
LB: loop body
LE: loop exit
PB: predicated region body
PF: predicated region fallthrough
CT: control target
= control target key end

     0   :  { %9 = vsyncpa [#allocation3], 0  ;;  %s1228_s0 = inlined_call_operand.hbm [shape: bf16[16,784], index: 0, kind: input, shape index: {}]   ;;  %s1229_s1 = inlined_call_operand.hbm [shape: bf16[784,128], index: 1, kind: input, shape index: {}]   ;;  %s1230_s2 = inlined_call_operand.vmem [shape: f32[1,128], index: 2, kind: input, shape index: {}]   ;;  %s1231_s3 = inlined_call_operand.hbm [shape: bf16[128,128], index: 3, kind: input, shape index: {}]   ;;  %s1232_s4 = inlined_call_operand.hbm [shape: f32[16,128], index: 4, kind: output, shape index: {}]  }
   0x1   :  { %10 = vsyncpa [#allocation6], 0 }
   0x2   :  { %11 = vsyncpa [#allocation4], 0  ;;  %s1163_s15 = smov [#allocation5]  }
   0x3   :  { %s29_s16 = sshll.u32 %s1163_s15, 4  ;;  %s30_s16 = int_to_ptr.vmem [resolvable:$true] %s29_s16 }
   0x4   :  { %s1085_s17 = scalar_lea.vmem %s30_s16, 6272  ;;  %p1090_p1 = scmp.lt.s32.totalorder %s30_s16, %s30_s16 }
   0x5   :  { %p1086_p0 = scmp.ne.s32.totalorder %s30_s16, %s1085_s17  ;;  %p1091_p2 = scmp.lt.s32.totalorder %s1085_s17, %s1085_s17 }
   0x7   :  { %p1092_p3 = por %p1091_p2, %p1090_p1 }
   0x9   :  { %p1093_p4 = pnand %p1092_p3, %p1086_p0 }
   0xb   :  { %1096 = shalt.err (!%p1093_p4)
}
   0xc   :  { %s1164_s18 = smov 64   ;;  %s1165_s19 = smov 4  }
   0xd   :  { %35 = dma.hbm_to_vmem [thread:$0]  %s1229_s1, 6272, %s30_s16, [#allocation6], %s1164_s18, %s1164_s18, %s1165_s19  }
   0xe   :  { %s1166_s22 = smov [#allocation2]  }
   0xf   :  { %s17_s23 = sshll.u32 %s1166_s22, 4  ;;  %s18_s23 = int_to_ptr.vmem [resolvable:$true] %s17_s23 }
  0x10   :  { %s1105_s24 = scalar_lea.vmem %s18_s23, 896  ;;  %p1110_p6 = scmp.lt.s32.totalorder %s18_s23, %s18_s23 }
  0x11   :  { %p1106_p5 = scmp.ne.s32.totalorder %s18_s23, %s1105_s24  ;;  %p1111_p7 = scmp.lt.s32.totalorder %s1105_s24, %s1105_s24 }
  0x13   :  { %p1112_p8 = por %p1111_p7, %p1110_p6 }
  0x15   :  { %p1113_p9 = pnand %p1112_p8, %p1106_p5 }
  0x17   :  { %1116 = shalt.err (!%p1113_p9)
}
  0x18   :  { %s1167_s25 = smov 448   ;;  %s1168_s26 = smov 28  }
  0x19   :  { %23 = dma.hbm_to_vmem [thread:$0]  %s1228_s0, 896, %s18_s23, [#allocation3], %s1167_s25, %s1167_s25, %s1168_s26  }
  0x1a   :  { %s1169_s29 = smov [#allocation7]  }
  0x1b   :  { %s43_s30 = sshll.u32 %s1169_s29, 4  ;;  %s44_s30 = int_to_ptr.vmem [resolvable:$true] %s43_s30 }
  0x1c   :  { %s1125_s1 = scalar_lea.vmem %s44_s30, 1024  ;;  %p1130_p11 = scmp.lt.s32.totalorder %s44_s30, %s44_s30 }
  0x1d   :  { %p1126_p10 = scmp.ne.s32.totalorder %s44_s30, %s1125_s1  ;;  %p1131_p12 = scmp.lt.s32.totalorder %s1125_s1, %s1125_s1 }
  0x1f   :  { %p1132_p13 = por %p1131_p12, %p1130_p11 }
  0x21   :  { %p1133_p0 = pnand %p1132_p13, %p1126_p10 }
  0x23   :  { %1136 = shalt.err (!%p1133_p0)
}
  0x24   :  { %49 = dma.hbm_to_vmem [thread:$0]  %s1231_s3, 1024, %s44_s30, [#allocation6], %s1164_s18, %s1164_s18, %s1165_s19  }
  0x25   :  { %1157 = dma.done.wait [#allocation3], 896  }
  0x26   :  { %1158 = vsyncadd [#allocation3], 4294966400 }
  0x27   :  { %1159 = dma.done.wait [#allocation6], 7296  }
  0x28   :  { %1160 = vsyncadd [#allocation6], 4294960000  ;;  %v1002_v0 = vld [vmem:[#allocation5 + $0x78] sm:$0xff]   ;;  %v1006_v4 = vld [vmem:[#allocation5 + $0x70] sm:$0xff]   ;;  %v1170_v38 = vmov 0.0   ;;  %vm1171_vm0 = vmmov 0  }
  0x29   :  { %v1003_v1 = vld [vmem:[#allocation5 + $0x38] sm:$0xff]   ;;  %887 = vmatprep.subr.bf16.mxu0 %v1002_v0  ;;  %v1007_v5 = vld [vmem:[#allocation5 + $0x30] sm:$0xff]   ;;  %v1010_v8 = vld [vmem:[#allocation5 + $0x68] sm:$0xff]   ;;  %vm502_vm1 = vcmask 130048  }
  0x2a   :  { %v1004_v2 = vld [vmem:[#allocation5 + $0xf8] sm:$0xff]   ;;  %888 = vmatpush3.bf16.msra.mxu0 %v1003_v1  ;;  %v1008_v6 = vld [vmem:[#allocation5 + $0xf0] sm:$0xff]   ;;  %v1011_v9 = vld [vmem:[#allocation5 + $0x28] sm:$0xff]  }
  0x2b   :  { %v1005_v3 = vld [vmem:[#allocation5 + $0xb8] sm:$0xff]   ;;  %909 = vmatprep.subr.bf16.mxu1 %v1004_v2  ;;  %889 = vmatprep.subr.bf16.mxu0 %v1006_v4  ;;  %v1009_v7 = vld [vmem:[#allocation5 + $0xb0] sm:$0xff]   ;;  %v1012_v10 = vld [vmem:[#allocation5 + $0xe8] sm:$0xff]  }
  0x2c   :  { %910 = vmatpush3.bf16.msra.mxu1 %v1005_v3  ;;  %v1013_v11 = vld [vmem:[#allocation5 + $0xa8] sm:$0xff]   ;;  %v1014_v12 = vld [vmem:[#allocation5 + $0x60] sm:$0xff]   ;;  %v1018_v16 = vld [vmem:[#allocation5 + $0x58] sm:$0xff]  }
  0x2d   :  { %911 = vmatprep.subr.bf16.mxu1 %v1008_v6  ;;  %v1015_v13 = vld [vmem:[#allocation5 + $0x20] sm:$0xff]   ;;  %v1019_v17 = vld [vmem:[#allocation5 + $0x18] sm:$0xff]   ;;  %v1022_v20 = vld [vmem:[#allocation5 + $0x50] sm:$0xff]  }
  0x2e   :  { %890 = vmatpush3.bf16.msra.mxu0 %v1007_v5  ;;  %v1016_v14 = vld [vmem:[#allocation5 + $0xe0] sm:$0xff]   ;;  %v1020_v18 = vld [vmem:[#allocation5 + $0xd8] sm:$0xff]   ;;  %v1023_v21 = vld [vmem:[#allocation5 + $0x10] sm:$0xff]  }
  0x2f   :  { %891 = vmatprep.subr.bf16.mxu0 %v1010_v8  ;;  %v1017_v15 = vld [vmem:[#allocation5 + $0xa0] sm:$0xff]   ;;  %v1021_v19 = vld [vmem:[#allocation5 + $0x98] sm:$0xff]   ;;  %v1024_v22 = vld [vmem:[#allocation5 + $0xd0] sm:$0xff]  }
  0x30   :  { %912 = vmatpush3.bf16.msra.mxu1 %v1009_v7  ;;  %v1025_v23 = vld [vmem:[#allocation5 + $0x90] sm:$0xff]   ;;  %v1026_v24 = vld [vmem:[#allocation5 + $0x48] sm:$0xff]   ;;  %v1030_v28 = vld [vmem:[#allocation5 + $0x40] sm:$0xff]  }
  0x31   :  { %913 = vmatprep.subr.bf16.mxu1 %v1012_v10  ;;  %v1027_v25 = vld [vmem:[#allocation5 + $0x8] sm:$0xff]   ;;  %v1031_v29 = vld [vmem:[#allocation5] sm:$0xff]   ;;  %v1037_v34 = vld [vmem:[#allocation5 + $0x178] sm:$0xff]  }
  0x32   :  { %892 = vmatpush3.bf16.msra.mxu0 %v1011_v9  ;;  %v1028_v26 = vld [vmem:[#allocation5 + $0xc8] sm:$0xff]   ;;  %v1032_v30 = vld [vmem:[#allocation5 + $0xc0] sm:$0xff]   ;;  %v1040_v36 = vld [vmem:[#allocation2 + $0xc] ss:$28 sps:$4 sm:$0xff]  }
  0x33   :  { %893 = vmatprep.subr.bf16.mxu0 %v1014_v12  ;;  %v1029_v27 = vld [vmem:[#allocation5 + $0x88] sm:$0xff]   ;;  %v1036_v33 = vld [vmem:[#allocation5 + $0x80] sm:$0xff]   ;;  %v1041_v37 = vld [vmem:[#allocation5 + $0x138] sm:$0xff]   ;;  %579 = vmatprep.mubr.bf16.mxu1 %v1040_v36 }
  0x34   :  { %914 = vmatpush3.bf16.msra.mxu1 %v1013_v11  ;;  %v1033_v31 = vld [vmem:[#allocation2] ss:$28 sps:$4 sm:$0xff]   ;;  %v1038_v35 = vld [vmem:[#allocation2 + $0x8] ss:$28 sps:$4 sm:$0xff]   ;;  %v1048_v45 = vld [vmem:[#allocation5 + $0x158] sm:$0xff]  }
  0x35   :  { %915 = vmatprep.subr.bf16.mxu1 %v1016_v14  ;;  %v1035_v32 = vld [vmem:[#allocation2 + $0x4] ss:$28 sps:$4 sm:$0xff]   ;;  %v1042_v39 = vld [vmem:[#allocation5 + $0x170] sm:$0xff]   ;;  %v1046_v43 = vld [vmem:[#allocation5 + $0x160] sm:$0xff]  }
  0x36   :  { %894 = vmatpush3.bf16.msra.mxu0 %v1015_v13  ;;  %538 = vmatprep.mubr.bf16.mxu0 %v1035_v32  ;;  %v1043_v40 = vld [vmem:[#allocation5 + $0x130] sm:$0xff]   ;;  %v1044_v41 = vld [vmem:[#allocation5 + $0x168] sm:$0xff]   ;;  %v1047_v44 = vld [vmem:[#allocation5 + $0x120] sm:$0xff]  }
  0x37   :  { %895 = vmatprep.subr.bf16.mxu0 %v1018_v16  ;;  %v1045_v42 = vld [vmem:[#allocation5 + $0x128] sm:$0xff]   ;;  %v1049_v46 = vld [vmem:[#allocation5 + $0x118] sm:$0xff]   ;;  %v1050_v47 = vld [vmem:[#allocation5 + $0x150] sm:$0xff]  }
  0x38   :  { %916 = vmatpush3.bf16.msra.mxu1 %v1017_v15  ;;  %v1056_v48 = vld [vmem:[#allocation5 + $0x180] sm:$0xff]   ;;  %v1051_v49 = vld [vmem:[#allocation5 + $0x110] sm:$0xff]   ;;  %v1059_v50 = vld [vmem:[#allocation2 + $0x14] ss:$28 sps:$4 sm:$0xff]  }
  0x39   :  { %917 = vmatprep.subr.bf16.mxu1 %v1020_v18  ;;  %v1052_v51 = vld [vmem:[#allocation5 + $0x148] sm:$0xff]   ;;  %v1060_v52 = vld [vmem:[#allocation2 + $0x18] ss:$28 sps:$4 sm:$0xff]   ;;  %v1057_v56 = vld [vmem:[#allocation2 + $0x10] ss:$28 sps:$4 sm:$0xff]  }
  0x3a   :  { %896 = vmatpush3.bf16.msra.mxu0 %v1019_v17  ;;  %v1053_v53 = vld [vmem:[#allocation5 + $0x108] sm:$0xff]   ;;  %v1054_v54 = vld [vmem:[#allocation5 + $0x140] sm:$0xff]   ;;  %v1062_v58 = vld [vmem:[#allocation7 + $0x30] sm:$0xff]  }
  0x3b   :  { %897 = vmatprep.subr.bf16.mxu0 %v1022_v20  ;;  %v1055_v55 = vld [vmem:[#allocation5 + $0x100] sm:$0xff]   ;;  %v1063_v59 = vld [vmem:[#allocation7 + $0x28] sm:$0xff]   ;;  %v1064_v60 = vld [vmem:[#allocation7 + $0x20] sm:$0xff]  }
  0x3c   :  { %918 = vmatpush3.bf16.msra.mxu1 %v1021_v19  ;;  %v1061_v57 = vld [vmem:[#allocation7 + $0x38] sm:$0xff]   ;;  %v1066_v62 = vld [vmem:[#allocation7 + $0x10] sm:$0xff]   ;;  %v1067_v63 = vld [vmem:[#allocation7 + $0x8] sm:$0xff]  }
  0x3d   :  { %919 = vmatprep.subr.bf16.mxu1 %v1024_v22  ;;  %v1065_v61 = vld [vmem:[#allocation7 + $0x18] sm:$0xff]   ;;  %v1068_v0 = vld [vmem:[#allocation7] sm:$0xff]  }
  0x3e   :  { %898 = vmatpush3.bf16.msra.mxu0 %v1023_v21  ;;  %v821_v13 = vld [vmem:[%s1230_s2] ss:$0 sm:$0xff]  ;;  %s1172_s2 = smov [#allocation8]  }
  0x3f   :  { %899 = vmatprep.subr.bf16.mxu0 %v1026_v24  ;;  %s808_s7 = sshll.u32 %s1172_s2, 4  ;;  %s809_s7 = int_to_ptr.vmem [resolvable:$true] %s808_s7 }
  0x40   :  { %920 = vmatpush3.bf16.msra.mxu1 %v1025_v23  ;;  %s1137_s8 = scalar_lea.vmem %s809_s7, 256  ;;  %p1142_p2 = scmp.lt.s32.totalorder %s809_s7, %s809_s7 }
  0x41   :  { %921 = vmatprep.subr.bf16.mxu1 %v1028_v26  ;;  %p1138_p1 = scmp.ne.s32.totalorder %s809_s7, %s1137_s8  ;;  %p1143_p3 = scmp.lt.s32.totalorder %s1137_s8, %s1137_s8 }
  0x42   :  { %900 = vmatpush3.bf16.msra.mxu0 %v1027_v25 }
  0x43   :  { %901 = vmatprep.subr.bf16.mxu0 %v1030_v28  ;;  %p1144_p4 = por %p1143_p3, %p1142_p2 }
  0x44   :  { %922 = vmatpush3.bf16.msra.mxu1 %v1029_v27 }
  0x45   :  { %923 = vmatprep.subr.bf16.mxu1 %v1032_v30  ;;  %p1145_p5 = pnand %p1144_p4, %p1138_p1 }
  0x46   :  { %902 = vmatpush3.bf16.msra.mxu0 %v1031_v29 }
  0x47   :  { %931 = vmatprep.subr.bf16.mxu0 %v1037_v34 }
  0x48   :  { %924 = vmatpush3.bf16.msra.mxu1 %v1036_v33 }
  0x49   :  { %539 = vmatmul.mubr.bf16.vlgmr.msra.gmra.mxu0 %v1033_v31  ;;  %964 = vmatprep.subr.bf16.mxu1 %v1170_v38 }
  0x4a   :  { %932 = vmatpush3.bf16.msra.mxu0 %v1041_v37  ;;  %620 = vmatprep.mubr.bf16.mxu0 %v1059_v50 }
  0x4b   :  { %580 = vmatmul.mubr.bf16.vlgmr.msra.gmra.mxu1 %v1038_v35  ;;  %933 = vmatprep.subr.bf16.mxu0 %v1042_v39  ;;  %v778_v35 = vlaneseq }
  0x4c   :  { %966 = vmatprep.mubr.msk.bf16.mxu1 %vm1171_vm0, %v1170_v38  ;;  %965 = vmatpush3.bf16.msra.mxu1 %v1056_v48 }
  0x4d   :  { %970 = vmatprep.subr.bf16.mxu1 %v1170_v38  ;;  %v779_v36 = vand.u32 127, %v778_v35 }
  0x4e   :  { %934 = vmatpush3.bf16.msra.mxu0 %v1043_v40 }
  0x4f   :  { %935 = vmatprep.subr.bf16.mxu0 %v1044_v41  ;;  %vm780_vm2 = vcmp.lt.s32.totalorder %v779_v36, 10 }
  0x52   :  { %936 = vmatpush3.bf16.msra.mxu0 %v1045_v42 }
  0x53   :  { %937 = vmatprep.subr.bf16.mxu0 %v1046_v43  ;;  %967 = vmatmul.mubr.msk.bf16.vlgmr.msra.gmra.mxu1 %vm502_vm1, %v1060_v52 }
  0x54   :  { %986 = vmatprep.mubr.msk.bf16.mxu1 %vm1171_vm0, %v1170_v38  ;;  %971 = vmatpush3.bf16.msra.mxu1 %v1061_v57 }
  0x55   :  { %972 = vmatprep.subr.bf16.mxu1 %v1170_v38 }
  0x56   :  { %938 = vmatpush3.bf16.msra.mxu0 %v1047_v44 }
  0x57   :  { %939 = vmatprep.subr.bf16.mxu0 %v1048_v45 }
  0x58   :  { %973 = vmatpush3.bf16.msra.mxu1 %v1062_v58 }
  0x59   :  { %974 = vmatprep.subr.bf16.mxu1 %v1170_v38 }
  0x5a   :  { %940 = vmatpush3.bf16.msra.mxu0 %v1049_v46 }
  0x5b   :  { %941 = vmatprep.subr.bf16.mxu0 %v1050_v47 }
  0x5c   :  { %975 = vmatpush3.bf16.msra.mxu1 %v1063_v59 }
  0x5d   :  { %976 = vmatprep.subr.bf16.mxu1 %v1170_v38 }
  0x5e   :  { %942 = vmatpush3.bf16.msra.mxu0 %v1051_v49 }
  0x5f   :  { %943 = vmatprep.subr.bf16.mxu0 %v1052_v51 }
  0x60   :  { %977 = vmatpush3.bf16.msra.mxu1 %v1064_v60 }
  0x61   :  { %978 = vmatprep.subr.bf16.mxu1 %v1170_v38 }
  0x62   :  { %944 = vmatpush3.bf16.msra.mxu0 %v1053_v53 }
  0x63   :  { %945 = vmatprep.subr.bf16.mxu0 %v1054_v54 }
  0x64   :  { %979 = vmatpush3.bf16.msra.mxu1 %v1065_v61 }
  0x65   :  { %980 = vmatprep.subr.bf16.mxu1 %v1170_v38 }
  0x66   :  { %946 = vmatpush3.bf16.msra.mxu0 %v1055_v55 }
  0x68   :  { %981 = vmatpush3.bf16.msra.mxu1 %v1066_v62 }
  0x69   :  { %621 = vmatmul.mubr.bf16.vlgmr.msra.gmra.mxu0 %v1057_v56  ;;  %982 = vmatprep.subr.bf16.mxu1 %v1170_v38 }
  0x6c   :  { %983 = vmatpush3.bf16.msra.mxu1 %v1067_v63 }
  0x6d   :  { %984 = vmatprep.subr.bf16.mxu1 %v1170_v38 }
  0x70   :  { %985 = vmatpush3.bf16.msra.mxu1 %v1068_v0 }
 0x109   :  { %v903_v4 = vpop.f32.mrf.mxu0 }
 0x10b   :  { %v925_v1 = vpop.f32.mrf.mxu1  ;;  %v904_v7 = vpop.f32.mrf.mxu0 }
 0x10c   :  { %v905_v12 = vadd.f32 %v904_v7, %v903_v4 }
 0x10d   :  { %v926_v2 = vpop.f32.mrf.mxu1  ;;  %v906_v10 = vpop.f32.mrf.mxu0 }
 0x10e   :  { %v541_v15 = vadd.f32 %v905_v12, %v821_v13  ;;  %v927_v16 = vadd.f32 %v926_v2, %v925_v1 }
 0x10f   :  { %v928_v3 = vpop.f32.mrf.mxu1  ;;  %v907_v14 = vpop.f32.mrf.mxu0 }
 0x110   :  { %v908_v17 = vadd.f32 %v907_v14, %v906_v10  ;;  %v582_v20 = vadd.f32 %v927_v16, %v541_v15 }
 0x111   :  { %v929_v5 = vpop.f32.mrf.mxu1 }
 0x112   :  { %v544_v21 = vadd.f32 %v908_v17, %v821_v13  ;;  %v930_v22 = vadd.f32 %v929_v5, %v928_v3 }
 0x113   :  { %v663_v6 = vpop.f32.mrf.mxu1 }
 0x114   :  { %v585_v27 = vadd.f32 %v930_v22, %v544_v21 }
 0x115   :  { %v968_v8 = vpop.f32.mrf.mxu1 }
 0x117   :  { %v666_v9 = vpop.f32.mrf.mxu1 }
 0x119   :  { %v969_v11 = vpop.f32.mrf.mxu1 }
 0x129   :  { %v947_v18 = vpop.f32.mrf.mxu0 }
 0x12b   :  { %v948_v19 = vpop.f32.mrf.mxu0 }
 0x12c   :  { %v949_v23 = vadd.f32 %v948_v19, %v947_v18 }
 0x12d   :  { %v950_v24 = vpop.f32.mrf.mxu0 }
 0x12e   :  { %v623_v25 = vadd.f32 %v949_v23, %v582_v20 }
 0x12f   :  { %v951_v26 = vpop.f32.mrf.mxu0 }
 0x130   :  { %v952_v28 = vadd.f32 %v951_v26, %v950_v24  ;;  %v664_v29 = vadd.f32 %v663_v6, %v623_v25 }
 0x132   :  { %v626_v30 = vadd.f32 %v952_v28, %v585_v27  ;;  %v670_v32 = vmax.f32 %v664_v29, 0.0 }
 0x134   :  { %v667_v31 = vadd.f32 %v666_v9, %v626_v30 }
 0x136   :  { %v671_v33 = vmax.f32 %v667_v31, 0.0 }
 0x138   :  { %v672_v34 = vpack.c.bf16 %v671_v33, %v670_v32 }
 0x13a   :  { %987 = vmatmul.mubr.bf16.vlgmr.msra.gmra.mxu1 %v672_v34 }
 0x1fa   :  { %v771_v37 = vpop.f32.mrf.mxu1 }
 0x1fb   :  { %v781_v38 = vsel %vm780_vm2, %v771_v37, -inf }
 0x1fc   :  { %783 = vmax.xlane.f32.xlu0 %v781_v38  ;;  %v988_v39 = vpop.f32.mrf.mxu1 }
 0x1fe   :  { %v774_v40 = vpop.f32.mrf.mxu1 }
 0x1ff   :  { %v782_v41 = vsel %vm780_vm2, %v774_v40, -inf }
 0x200   :  { %785 = vmax.xlane.f32.xlu0 %v782_v41  ;;  %v989_v42 = vpop.f32.mrf.mxu1 }
 0x285   :  { %v784_v43 = vpop.xlane.xlu0 %783 }
 0x286   :  { %v787_v44 = vsub.f32 %v781_v38, %v784_v43 }
 0x288   :  { %v789_v45 = vmul.f32 1.442695, %v787_v44 }
 0x289   :  { %v786_v46 = vpop.xlane.xlu0 %785 }
 0x28a   :  { %1069 = vpow2.f32 %v789_v45  ;;  %v788_v47 = vsub.f32 %v782_v41, %v786_v46 }
 0x28c   :  { %v791_v48 = vmul.f32 1.442695, %v788_v47 }
 0x28e   :  { %1071 = vpow2.f32 %v791_v48 }
 0x297   :  { %v1070_v49 = vpop.eup %1069 }
 0x298   :  { %793 = vadd.xlane.f32.xlu1 %v1070_v49 }
 0x29b   :  { %v1072_v50 = vpop.eup %1071 }
 0x29c   :  { %795 = vadd.xlane.f32.xlu1 %v1072_v50 }
 0x321   :  { %v794_v51 = vpop.xlane.xlu1 %793 }
 0x322   :  { %1073 = vrcp.f32 %v794_v51 }
 0x325   :  { %v796_v52 = vpop.xlane.xlu1 %795 }
 0x326   :  { %1075 = vrcp.f32 %v796_v52 }
 0x32f   :  { %v1074_v53 = vpop.eup %1073 }
 0x330   :  { %v799_v54 = vmul.f32 %v1074_v53, %v1070_v49 }
 0x332   :  { %801 = vst [vmem:[#allocation8] sm:$0xff] %v799_v54 }
 0x333   :  { %v1076_v55 = vpop.eup %1075 }
 0x334   :  { %v800_v56 = vmul.f32 %v1076_v55, %v1072_v50 }
 0x336   :  { %802 = vst [vmem:[#allocation8 + $0x8] sm:$0xff] %v800_v56 }
 0x337   :  { %1148 = shalt.err (!%p1145_p5)
}
 0x338   :  { %s1173_s9 = smov 128   ;;  %s1174_s10 = smov 8  }
 0x339   :  { %814 = dma.vmem_to_hbm [thread:$0]  %s809_s7, 256, %s1232_s4, [#allocation4], %s1173_s9, %s1173_s9, %s1174_s10  }
 0x33a   :  { %1161 = dma.done.wait [#allocation4], 256  }
 0x33b   :  { %1162 = vsyncadd [#allocation4], 4294967040 }
 0x33c   :  { %818 = vsyncpa [#allocation3], 1 }
 0x33d   :  { %819 = vsyncpa [#allocation6], 1 }
 0x33e   :  { %820 = vsyncpa [#allocation4], 1 }

</bundles_post_ra>
